<compile_context>
chip_gen: v6e
topology: v6e:2x2x1
jax: 0.10.0
libtpu: 0.0.40
codegen_flags: <defaults>
</compile_context>

<pallas_src>
import functools

import jax
import jax.numpy as jnp
from jax.experimental import pallas as pl
from jax.experimental.pallas import tpu as pltpu


# ----------------------------------------------------------------------------
# Chip / tiling helpers
# ----------------------------------------------------------------------------
def _tpu_vmem_caps():
    """Returns (physical VMEM bytes, budget handed to Mosaic).

    Budget = capacity - 16 MiB (headroom for Mosaic internal scratch /
    semaphores), capped at 64 MiB: 48 MiB on v7x (64 MiB/TC), 64 MiB on
    v5e/v6e (128 MiB)."""
    try:
        cap = int(pltpu.get_tpu_info().vmem_capacity_bytes)
    except Exception:
        cap = 64 << 20  # assume the smallest generation (v7x per-TC)
    budget = max(16 << 20, min(cap - (16 << 20), 64 << 20))
    return cap, budget


def _granule(dtype):
    """Dtype-aware sublane granule: 8 for f32, 16 for bf16, 32 for 8-bit."""
    return max(8, 32 // jnp.dtype(dtype).itemsize)


def _pick_tile(dim, preferred, granule):
    """Largest t <= preferred with dim % t == 0 and t % granule == 0.

    Falls back to the full dim (always a legal block size)."""
    if dim <= preferred:
        return dim
    t = (preferred // granule) * granule
    while t >= granule:
        if dim % t == 0:
            return t
        t -= granule
    return dim


# ----------------------------------------------------------------------------
# Kernel 1: per-row logit losses + teacher top-1 predictions, tiled over batch.
#   inputs : targets (tn,1) int32, student_logits (tn,M), teacher_logits (tn,M)
#   outputs: ce (tn,1) f32, kl (tn,1) f32 (un-rescaled), preds (tn,1) int32
# ----------------------------------------------------------------------------
def _logit_kernel(tgt_ref, s_ref, t_ref, ce_ref, kl_ref, preds_ref, *, temperature):
    s = s_ref[...].astype(jnp.float32)          # (tn, M)
    t = t_ref[...].astype(jnp.float32)          # (tn, M)
    tgt = tgt_ref[...]                          # (tn, 1) int32
    n, m = s.shape
    col = jax.lax.broadcasted_iota(jnp.int32, (n, m), 1)

    # Row maxima computed once, reused below (max(x/T) = max(x)/T for T > 0).
    s_max = jnp.max(s, axis=-1, keepdims=True)
    t_max = jnp.max(t, axis=-1, keepdims=True)

    # ---- ground-truth cross-entropy per row: lse(s) - s[target] ----
    s_lse = jnp.log(jnp.sum(jnp.exp(s - s_max), axis=-1, keepdims=True)) + s_max
    picked = jnp.sum(jnp.where(col == tgt, s, 0.0), axis=-1, keepdims=True)
    ce_ref[...] = s_lse - picked

    # ---- KD loss per row: KL(p_t || p_s) at temperature T, summed over classes.
    #      kl = (1/se) * sum_m e_t * (log p_t - log p_s)   (one divide per row) ----
    invT = 1.0 / temperature
    sT = s * invT
    tT = t * invT
    sT_max = s_max * invT
    tT_max = t_max * invT
    sT_lse = jnp.log(jnp.sum(jnp.exp(sT - sT_max), axis=-1, keepdims=True)) + sT_max
    log_ps = sT - sT_lse                        # student log_softmax(x/T)
    etT = jnp.exp(tT - tT_max)
    se = jnp.sum(etT, axis=-1, keepdims=True)
    log_pt = tT - tT_max - jnp.log(se)          # teacher log_softmax(x/T)
    inner = jnp.sum(etT * (log_pt - log_ps), axis=-1, keepdims=True)
    kl_ref[...] = inner / se

    # ---- teacher top-1 predictions (first index of max), reusing t_max ----
    idx = jnp.where(t == t_max, col, m)
    preds_ref[...] = jnp.min(idx, axis=-1, keepdims=True).astype(jnp.int32)


# ----------------------------------------------------------------------------
# Kernel 2: explanation loss, tiled over (batch, D) with scratch accumulators.
#   grid = (N//tn, D//td), D innermost ("arbitrary" reduction axis).
#   output: per-row (1 - cosine_similarity) as (N, 1) f32.
# Two variants:
#   _exp_kernel_vpu : f32 (or other) inputs, VPU fold+reduce, (tn,1) scratch.
#   _exp_kernel_mxu : bf16 inputs, products in bf16 on the VPU, reductions on
#                     the MXU via a resident (td,128) ones matrix, (tn,128)
#                     f32 scratch accumulators.
# ----------------------------------------------------------------------------
def _finalize_cosine(out_ref, dot, na2, nb2):
    # torch F.cosine_similarity clamps each norm separately with eps=1e-8:
    # max(sqrt(x), eps) == sqrt(max(x, eps^2)) for x >= 0.
    eps2 = jnp.float32(1e-16)
    inv_na = jax.lax.rsqrt(jnp.maximum(na2, eps2))
    inv_nb = jax.lax.rsqrt(jnp.maximum(nb2, eps2))
    out_ref[...] = 1.0 - dot * inv_na * inv_nb


def _exp_kernel_vpu(p_ref, q_ref, out_ref, dot_acc, na2_acc, nb2_acc):
    j = pl.program_id(1)

    @pl.when(j == 0)
    def _():
        dot_acc[...] = jnp.zeros_like(dot_acc)
        na2_acc[...] = jnp.zeros_like(na2_acc)
        nb2_acc[...] = jnp.zeros_like(nb2_acc)

    a = p_ref[...].astype(jnp.float32)          # (tn, td)
    b = q_ref[...].astype(jnp.float32)
    dot_acc[...] += jnp.sum(a * b, axis=-1, keepdims=True)
    na2_acc[...] += jnp.sum(a * a, axis=-1, keepdims=True)
    nb2_acc[...] += jnp.sum(b * b, axis=-1, keepdims=True)

    @pl.when(j == pl.num_programs(1) - 1)
    def _():
        _finalize_cosine(out_ref, dot_acc[...], na2_acc[...], nb2_acc[...])


def _exp_kernel_mxu(p_ref, q_ref, ones_ref, out_ref, dot_acc, na2_acc, nb2_acc):
    j = pl.program_id(1)

    @pl.when(j == 0)
    def _():
        dot_acc[...] = jnp.zeros_like(dot_acc)
        na2_acc[...] = jnp.zeros_like(na2_acc)
        nb2_acc[...] = jnp.zeros_like(nb2_acc)

    a = p_ref[...]                               # native bf16 products on VPU,
    b = q_ref[...]                               # f32 accumulation on the MXU.
    ones = ones_ref[...]                         # (td, 128), resident
    dot_acc[...] += jnp.dot(a * b, ones, preferred_element_type=jnp.float32)
    na2_acc[...] += jnp.dot(a * a, ones, preferred_element_type=jnp.float32)
    nb2_acc[...] += jnp.dot(b * b, ones, preferred_element_type=jnp.float32)

    @pl.when(j == pl.num_programs(1) - 1)
    def _():
        # All 128 output lanes carry the same per-row sum; take lane 0.
        _finalize_cosine(out_ref,
                         dot_acc[...][:, :1],
                         na2_acc[...][:, :1],
                         nb2_acc[...][:, :1])


# ----------------------------------------------------------------------------
# Wrapper (the "forward")
# ----------------------------------------------------------------------------
def teachers_explain_forward(student_logits, teacher_logits, targets,
                             student_maps, teacher_maps,
                             *,
                             gt_logit_loss_coef=1.0,
                             teacher_loss_coef=1.0,
                             teacher_logit_loss_coef=1.0,
                             exp_loss_coef=1.0,
                             temperature=4.0,
                             exp_distill=True,
                             skip_exp=False,
                             logit_block_rows=None,
                             exp_block=None):
    n, m = student_logits.shape
    assert teacher_logits.shape[1] == 1, "Ensemble Mode not Implemented yet!"
    t0 = teacher_logits[:, 0]                                # (N, M), native dtype
    tgt = targets.astype(jnp.int32).reshape(n, 1)            # (N, 1)

    vmem_cap, vmem_budget = _tpu_vmem_caps()
    T = float(temperature)

    # -------------------- logit kernel (tiled over batch) --------------------
    lg = _granule(student_logits.dtype)
    if logit_block_rows is not None:
        tnb = logit_block_rows
    else:
        itemsize_l = jnp.dtype(student_logits.dtype).itemsize
        # VMEM/M-aware row tile: 2 inputs x 2 pipeline buffers (itemsize) plus
        # ~12 live (tnb, M) f32 temporaries inside the kernel.
        tnb_vmem = max(lg, vmem_budget // max(1, m * (4 * itemsize_l + 48)))
        # Keep >= 2 row blocks where possible so v7x megacore uses both TCs.
        preferred = max(lg, min(256, tnb_vmem, max(lg, n // 2)))
        tnb = _pick_tile(n, preferred, lg)
    assert n % tnb == 0, (n, tnb)
    # TODO(synk): for very large class counts (M >~ 16K) the class dim should
    # also be tiled with an online logsumexp; not needed for typical KD setups.

    ce_rows, kl_rows, preds = pl.pallas_call(
        functools.partial(_logit_kernel, temperature=T),
        grid_spec=pltpu.PrefetchScalarGridSpec(
            num_scalar_prefetch=0,
            grid=(n // tnb,),
            in_specs=[
                pl.BlockSpec((tnb, 1), lambda i: (i, 0)),
                pl.BlockSpec((tnb, m), lambda i: (i, 0)),
                pl.BlockSpec((tnb, m), lambda i: (i, 0)),
            ],
            out_specs=[
                pl.BlockSpec((tnb, 1), lambda i: (i, 0)),
                pl.BlockSpec((tnb, 1), lambda i: (i, 0)),
                pl.BlockSpec((tnb, 1), lambda i: (i, 0)),
            ],
        ),
        out_shape=[
            jax.ShapeDtypeStruct((n, 1), jnp.float32),
            jax.ShapeDtypeStruct((n, 1), jnp.float32),
            jax.ShapeDtypeStruct((n, 1), jnp.int32),
        ],
        compiler_params=pltpu.CompilerParams(
            dimension_semantics=("parallel",),
            vmem_limit_bytes=vmem_budget),
    )(tgt, student_logits, t0)

    gt_logit_loss = jnp.mean(ce_rows)
    teacher_logit_loss = jnp.mean(kl_rows) * (T * T)

    # -------------------- explanation kernel (tiled over batch x D) ----------
    if exp_distill and not skip_exp:
        c, h, w = student_maps.shape[1:]
        d = c * h * w
        pm = student_maps.reshape(n, d)                      # native dtype, no f32 copy
        tm0 = teacher_maps[:, 0].reshape(n, d)
        map_dtype = pm.dtype
        itemsize = jnp.dtype(map_dtype).itemsize
        eg = _granule(map_dtype)
        # MXU reduction path for bf16 maps (bf16 products, f32 MXU accumulation).
        use_mxu = (map_dtype == jnp.bfloat16) and (tm0.dtype == jnp.bfloat16)

        if exp_block is not None:
            tn, td = exp_block
        else:
            # >= 2 row blocks where possible (v7x megacore), dtype-aware granule.
            tn = _pick_tile(n, max(eg, min(256, n // 2)), eg)
            # VMEM accounting: 2 inputs x 2 buffers + ~3 product temporaries
            # + headroom; larger D-tile cap on the 128 MiB parts (v5e/v6e).
            per_block = vmem_budget // 10
            td_cap = 16384 if vmem_cap >= (100 << 20) else 8192
            td_pref = max(512, min(td_cap, per_block // max(1, tn * itemsize)))
            td = _pick_tile(d, td_pref, 128)
        assert n % tn == 0 and d % td == 0, (n, tn, d, td)

        in_specs = [
            pl.BlockSpec((tn, td), lambda i, j: (i, j)),
            pl.BlockSpec((tn, td), lambda i, j: (i, j)),
        ]
        args = [pm, tm0]
        if use_mxu:
            # Resident ones matrix: constant block index -> DMA'd once, reused.
            ones = jnp.ones((td, 128), dtype=map_dtype)
            in_specs.append(pl.BlockSpec((td, 128), lambda i, j: (0, 0)))
            args.append(ones)
            kernel = _exp_kernel_mxu
            acc_shape = (tn, 128)
        else:
            kernel = _exp_kernel_vpu
            acc_shape = (tn, 1)

        exp_rows = pl.pallas_call(
            kernel,
            grid_spec=pltpu.PrefetchScalarGridSpec(
                num_scalar_prefetch=0,
                grid=(n // tn, d // td),
                in_specs=in_specs,
                out_specs=pl.BlockSpec((tn, 1), lambda i, j: (i, 0)),
                scratch_shapes=[pltpu.VMEM(acc_shape, jnp.float32)] * 3,
            ),
            out_shape=jax.ShapeDtypeStruct((n, 1), jnp.float32),
            compiler_params=pltpu.CompilerParams(
                dimension_semantics=("parallel", "arbitrary"),
                vmem_limit_bytes=vmem_budget),
        )(*args)
        exp_loss = jnp.mean(exp_rows)
        exp_loss_value = exp_loss
    else:
        exp_loss = 0.0
        exp_loss_value = None

    loss = gt_logit_loss_coef * gt_logit_loss + teacher_loss_coef * (
        exp_loss_coef * exp_loss + teacher_logit_loss_coef * teacher_logit_loss)

    ret_dict = dict(loss=loss, logit_loss=teacher_logit_loss,
                    gt_logit_loss=gt_logit_loss,
                    teacher_logit_loss=teacher_logit_loss)
    if exp_loss_value is not None:
        ret_dict['exp_loss'] = exp_loss_value
    return loss, preds[:, 0], ret_dict


# ----------------------------------------------------------------------------
# Pure-JAX reference for verification
# ----------------------------------------------------------------------------
def _reference(student_logits, teacher_logits, targets, student_maps, teacher_maps,
               T=4.0):
    n = student_logits.shape[0]
    t0 = teacher_logits[:, 0]
    log_ps1 = jax.nn.log_softmax(student_logits, axis=-1)
    ce = -jnp.take_along_axis(log_ps1, targets[:, None], axis=-1)[:, 0]
    gt = jnp.mean(ce)
    log_ps = jax.nn.log_softmax(student_logits / T, axis=-1)
    pt = jax.nn.softmax(t0 / T, axis=-1)
    log_pt = jax.nn.log_softmax(t0 / T, axis=-1)
    kl = jnp.mean(jnp.sum(pt * (log_pt - log_ps), axis=-1)) * (T * T)
    a = student_maps.reshape(n, -1)
    b = teacher_maps[:, 0].reshape(n, -1)
    eps = 1e-8
    na = jnp.maximum(jnp.linalg.norm(a, axis=-1), eps)
    nb = jnp.maximum(jnp.linalg.norm(b, axis=-1), eps)
    cos = jnp.sum(a * b, -1) / (na * nb)
    exp = jnp.mean(1.0 - cos)
    preds = jnp.argmax(t0, axis=-1)
    loss = gt + (exp + kl)
    return loss, preds, gt, kl, exp


if __name__ == "__main__":
    N, M = 16, 32
    C, H, W = 4, 16, 16                      # D = 1024
    key = jax.random.PRNGKey(0)
    k1, k2, k3, k4, k5 = jax.random.split(key, 5)

    student_logits = jax.random.normal(k1, (N, M), dtype=jnp.float32)
    teacher_logits = jax.random.normal(k2, (N, 1, M), dtype=jnp.float32)
    targets = jax.random.randint(k3, (N,), 0, M, dtype=jnp.int32)
    student_maps = jax.random.normal(k4, (N, C, H, W), dtype=jnp.float32)
    teacher_maps = jax.random.normal(k5, (N, 1, C, H, W), dtype=jnp.float32)

    ref_loss, ref_preds, ref_gt, ref_kl, ref_exp = _reference(
        student_logits, teacher_logits, targets, student_maps, teacher_maps, T=4.0)

    def check(loss, preds, logs, rtol=1e-4, atol=1e-4):
        assert jnp.allclose(loss, ref_loss, rtol=rtol, atol=atol), (loss, ref_loss)
        assert jnp.allclose(logs['gt_logit_loss'], ref_gt, rtol=rtol, atol=atol)
        assert jnp.allclose(logs['teacher_logit_loss'], ref_kl, rtol=rtol, atol=atol)
        assert jnp.allclose(logs['exp_loss'], ref_exp, rtol=rtol, atol=atol)
        assert jnp.array_equal(preds, ref_preds.astype(jnp.int32))

    # --- run 1: auto tile selection (VMEM / dtype / megacore aware) ---
    loss, preds, logs = teachers_explain_forward(
        student_logits, teacher_logits, targets, student_maps, teacher_maps,
        gt_logit_loss_coef=1.0, teacher_loss_coef=1.0,
        teacher_logit_loss_coef=1.0, exp_loss_coef=1.0, temperature=4.0)
    jax.block_until_ready(loss)
    jax.block_until_ready(preds)
    check(loss, preds, logs)

    # --- run 2: forced small tiles to exercise multi-tile batch/D grids ---
    loss2, preds2, logs2 = teachers_explain_forward(
        student_logits, teacher_logits, targets, student_maps, teacher_maps,
        temperature=4.0, logit_block_rows=8, exp_block=(8, 512))
    jax.block_until_ready(loss2)
    check(loss2, preds2, logs2)

    # --- run 3: bf16 inputs -> MXU-reduction explanation path (multi-D tile) ---
    sb = student_logits.astype(jnp.bfloat16)
    tb = teacher_logits.astype(jnp.bfloat16)
    smb = student_maps.astype(jnp.bfloat16)
    tmb = teacher_maps.astype(jnp.bfloat16)
    rl, rp, rg, rk, re = _reference(
        sb.astype(jnp.float32), tb.astype(jnp.float32), targets,
        smb.astype(jnp.float32), tmb.astype(jnp.float32), T=4.0)
    loss3, preds3, logs3 = teachers_explain_forward(
        sb, tb, targets, smb, tmb, temperature=4.0, exp_block=(16, 512))
    jax.block_until_ready(loss3)
    assert jnp.allclose(loss3, rl, rtol=1e-2, atol=1e-2), (loss3, rl)
    assert jnp.allclose(logs3['exp_loss'], re, rtol=1e-2, atol=1e-2)
    assert jnp.array_equal(preds3, rp.astype(jnp.int32))

    print("KERNEL_OK")
</pallas_src>

<mosaic_0001>
module attributes {stable_mosaic.version = 11 : i64} {
  func.func @_logit_kernel(%arg0: i32, %arg1: memref<8x1xi32, #tpu.memory_space<vmem>>, %arg2: memref<8x32xf32, #tpu.memory_space<vmem>>, %arg3: memref<8x32xf32, #tpu.memory_space<vmem>>, %arg4: memref<8x1xf32, #tpu.memory_space<vmem>>, %arg5: memref<8x1xf32, #tpu.memory_space<vmem>>, %arg6: memref<8x1xi32, #tpu.memory_space<vmem>>) attributes {dimension_semantics = [#tpu.dimension_semantics<parallel>], iteration_bounds = array<i64: 2>, scalar_prefetch = 0 : i64, scratch_operands = 0 : i64, tpu.core_type = #tpu.core_type<tc>, window_params = [{transform_indices = @transform_0, window_bounds = array<i64: 8, 1>}, {transform_indices = @transform_1, window_bounds = array<i64: 8, 32>}, {transform_indices = @transform_2, window_bounds = array<i64: 8, 32>}, {transform_indices = @transform_3, window_bounds = array<i64: 8, 1>}, {transform_indices = @transform_4, window_bounds = array<i64: 8, 1>}, {transform_indices = @transform_5, window_bounds = array<i64: 8, 1>}]} {
    %c0 = arith.constant 0 : index
    %c0_0 = arith.constant 0 : index
    %0 = vector.load %arg2[%c0, %c0_0] : memref<8x32xf32, #tpu.memory_space<vmem>>, vector<8x32xf32>
    %c0_1 = arith.constant 0 : index
    %c0_2 = arith.constant 0 : index
    %1 = vector.load %arg3[%c0_1, %c0_2] : memref<8x32xf32, #tpu.memory_space<vmem>>, vector<8x32xf32>
    %c0_3 = arith.constant 0 : index
    %c0_4 = arith.constant 0 : index
    %2 = vector.load %arg1[%c0_3, %c0_4] : memref<8x1xi32, #tpu.memory_space<vmem>>, vector<8x1xi32>
    %3 = tpu.iota {dimensions = array<i32: 1>} : vector<8x32xi32>
    %cst = arith.constant dense<0xFF800000> : vector<8xf32>
    %4 = vector.multi_reduction <maximumf>, %0, %cst [1] : vector<8x32xf32> to vector<8xf32>
    %5 = vector.shape_cast %4 : vector<8xf32> to vector<8x1xf32>
    %cst_5 = arith.constant dense<0xFF800000> : vector<8xf32>
    %6 = vector.multi_reduction <maximumf>, %1, %cst_5 [1] : vector<8x32xf32> to vector<8xf32>
    %7 = vector.shape_cast %6 : vector<8xf32> to vector<8x1xf32>
    %8 = vector.broadcast %5 : vector<8x1xf32> to vector<8x32xf32>
    %9 = arith.subf %0, %8 : vector<8x32xf32>
    %10 = math.exp %9 : vector<8x32xf32>
    %cst_6 = arith.constant dense<0.000000e+00> : vector<8xf32>
    %11 = vector.multi_reduction <add>, %10, %cst_6 [1] : vector<8x32xf32> to vector<8xf32>
    %12 = vector.shape_cast %11 : vector<8xf32> to vector<8x1xf32>
    %13 = math.log %12 : vector<8x1xf32>
    %14 = arith.addf %13, %5 : vector<8x1xf32>
    %15 = vector.broadcast %2 : vector<8x1xi32> to vector<8x32xi32>
    %16 = arith.cmpi eq, %3, %15 : vector<8x32xi32>
    %cst_7 = arith.constant 0.000000e+00 : f32
    %17 = vector.broadcast %cst_7 : f32 to vector<8x32xf32>
    %18 = arith.select %16, %0, %17 : vector<8x32xi1>, vector<8x32xf32>
    %cst_8 = arith.constant dense<0.000000e+00> : vector<8xf32>
    %19 = vector.multi_reduction <add>, %18, %cst_8 [1] : vector<8x32xf32> to vector<8xf32>
    %20 = vector.shape_cast %19 : vector<8xf32> to vector<8x1xf32>
    %21 = arith.subf %14, %20 : vector<8x1xf32>
    %c0_9 = arith.constant 0 : index
    %c0_10 = arith.constant 0 : index
    %22 = vector.load %arg4[%c0_9, %c0_10] : memref<8x1xf32, #tpu.memory_space<vmem>>, vector<8x1xf32>
    tpu.vector_store %arg4[%c0_9, %c0_10], %21 {strides = array<i32>} : memref<8x1xf32, #tpu.memory_space<vmem>>, vector<8x1xf32>,
    %cst_11 = arith.constant 2.500000e-01 : f32
    %23 = vector.broadcast %cst_11 : f32 to vector<8x32xf32>
    %24 = arith.mulf %0, %23 : vector<8x32xf32>
    %cst_12 = arith.constant 2.500000e-01 : f32
    %25 = vector.broadcast %cst_12 : f32 to vector<8x32xf32>
    %26 = arith.mulf %1, %25 : vector<8x32xf32>
    %cst_13 = arith.constant 2.500000e-01 : f32
    %27 = vector.broadcast %cst_13 : f32 to vector<8x1xf32>
    %28 = arith.mulf %5, %27 : vector<8x1xf32>
    %cst_14 = arith.constant 2.500000e-01 : f32
    %29 = vector.broadcast %cst_14 : f32 to vector<8x1xf32>
    %30 = arith.mulf %7, %29 : vector<8x1xf32>
    %31 = vector.broadcast %28 : vector<8x1xf32> to vector<8x32xf32>
    %32 = arith.subf %24, %31 : vector<8x32xf32>
    %33 = math.exp %32 : vector<8x32xf32>
    %cst_15 = arith.constant dense<0.000000e+00> : vector<8xf32>
    %34 = vector.multi_reduction <add>, %33, %cst_15 [1] : vector<8x32xf32> to vector<8xf32>
    %35 = vector.shape_cast %34 : vector<8xf32> to vector<8x1xf32>
    %36 = math.log %35 : vector<8x1xf32>
    %37 = arith.addf %36, %28 : vector<8x1xf32>
    %38 = vector.broadcast %37 : vector<8x1xf32> to vector<8x32xf32>
    %39 = arith.subf %24, %38 : vector<8x32xf32>
    %40 = vector.broadcast %30 : vector<8x1xf32> to vector<8x32xf32>
    %41 = arith.subf %26, %40 : vector<8x32xf32>
    %42 = math.exp %41 : vector<8x32xf32>
    %cst_16 = arith.constant dense<0.000000e+00> : vector<8xf32>
    %43 = vector.multi_reduction <add>, %42, %cst_16 [1] : vector<8x32xf32> to vector<8xf32>
    %44 = vector.shape_cast %43 : vector<8xf32> to vector<8x1xf32>
    %45 = vector.broadcast %30 : vector<8x1xf32> to vector<8x32xf32>
    %46 = arith.subf %26, %45 : vector<8x32xf32>
    %47 = math.log %44 : vector<8x1xf32>
    %48 = vector.broadcast %47 : vector<8x1xf32> to vector<8x32xf32>
    %49 = arith.subf %46, %48 : vector<8x32xf32>
    %50 = arith.subf %49, %39 : vector<8x32xf32>
    %51 = arith.mulf %42, %50 : vector<8x32xf32>
    %cst_17 = arith.constant dense<0.000000e+00> : vector<8xf32>
    %52 = vector.multi_reduction <add>, %51, %cst_17 [1] : vector<8x32xf32> to vector<8xf32>
    %53 = vector.shape_cast %52 : vector<8xf32> to vector<8x1xf32>
    %54 = arith.divf %53, %44 : vector<8x1xf32>
    %c0_18 = arith.constant 0 : index
    %c0_19 = arith.constant 0 : index
    %55 = vector.load %arg5[%c0_18, %c0_19] : memref<8x1xf32, #tpu.memory_space<vmem>>, vector<8x1xf32>
    tpu.vector_store %arg5[%c0_18, %c0_19], %54 {strides = array<i32>} : memref<8x1xf32, #tpu.memory_space<vmem>>, vector<8x1xf32>,
    %56 = vector.broadcast %7 : vector<8x1xf32> to vector<8x32xf32>
    %57 = arith.cmpf oeq, %1, %56 : vector<8x32xf32>
    %c32_i32 = arith.constant 32 : i32
    %58 = vector.broadcast %c32_i32 : i32 to vector<8x32xi32>
    %59 = arith.select %57, %3, %58 : vector<8x32xi1>, vector<8x32xi32>
    %cst_20 = arith.constant dense<2147483647> : vector<8xi32>
    %60 = vector.multi_reduction <minsi>, %59, %cst_20 [1] : vector<8x32xi32> to vector<8xi32>
    %61 = vector.shape_cast %60 : vector<8xi32> to vector<8x1xi32>
    %c0_21 = arith.constant 0 : index
    %c0_22 = arith.constant 0 : index
    %62 = vector.load %arg6[%c0_21, %c0_22] : memref<8x1xi32, #tpu.memory_space<vmem>>, vector<8x1xi32>
    tpu.vector_store %arg6[%c0_21, %c0_22], %61 {strides = array<i32>} : memref<8x1xi32, #tpu.memory_space<vmem>>, vector<8x1xi32>,
    return
  }
  func.func @transform_0(%arg0: i32) -> (i32, i32) {
    %c0_i32 = arith.constant 0 : i32
    %c0_i32_0 = arith.constant 0 : i32
    return %arg0, %c0_i32 : i32, i32
  }
  func.func @transform_1(%arg0: i32) -> (i32, i32) {
    %c0_i32 = arith.constant 0 : i32
    %c0_i32_0 = arith.constant 0 : i32
    return %arg0, %c0_i32 : i32, i32
  }
  func.func @transform_2(%arg0: i32) -> (i32, i32) {
    %c0_i32 = arith.constant 0 : i32
    %c0_i32_0 = arith.constant 0 : i32
    return %arg0, %c0_i32 : i32, i32
  }
  func.func @transform_3(%arg0: i32) -> (i32, i32) {
    %c0_i32 = arith.constant 0 : i32
    %c0_i32_0 = arith.constant 0 : i32
    return %arg0, %c0_i32 : i32, i32
  }
  func.func @transform_4(%arg0: i32) -> (i32, i32) {
    %c0_i32 = arith.constant 0 : i32
    %c0_i32_0 = arith.constant 0 : i32
    return %arg0, %c0_i32 : i32, i32
  }
  func.func @transform_5(%arg0: i32) -> (i32, i32) {
    %c0_i32 = arith.constant 0 : i32
    %c0_i32_0 = arith.constant 0 : i32
    return %arg0, %c0_i32 : i32, i32
  }
}

</mosaic_0001>

<bundles_post_ra>
// kernel: tpu_custom_call.1
= control target key start
LH: loop header
LB: loop body
LE: loop exit
PB: predicated region body
PF: predicated region fallthrough
CT: control target
= control target key end

     0   :  { %11 = vsyncpa [#allocation3], 0  ;;  %s828_s0 = inlined_call_operand.vmem [shape: s32[16,1], index: 0, kind: input, shape index: {}]   ;;  %s829_s1 = inlined_call_operand.vmem [shape: f32[16,32], index: 1, kind: input, shape index: {}]   ;;  %s830_s2 = inlined_call_operand.hbm [shape: f32[16,32], index: 2, kind: input, shape index: {}]   ;;  %s831_s3 = inlined_call_operand.vmem [shape: f32[16,1], index: 3, kind: output, shape index: {0}]   ;;  %s832_s4 = inlined_call_operand.vmem [shape: f32[16,1], index: 4, kind: output, shape index: {1}]   ;;  %s833_s5 = inlined_call_operand.vmem [shape: s32[16,1], index: 5, kind: output, shape index: {2}]  }
   0x1   :  { %13 = vsyncpa [#allocation3 + $0x1], 0  ;;  %s693_s18 = smov 0   ;;  %s695_s19 = smov 0  }
   0x2   :  { %s697_s20 = smov 0   ;;  %s699_s21 = smov 0  }
   0x3 LB: > { %s712_s22 = sadd.s32 4294967295, %s659_s21   ;;  %s715_s23 = sadd.s32 1, %s659_s21   ;;  %s659_s21 = sphi %s699_s21, %s843_s21   ;;  %s655_s20 = sphi %s697_s20, %s842_s20   ;;  %s651_s19 = sphi %s695_s19, %s841_s19   ;;  %s647_s18 = sphi %s693_s18, %s840_s18  }
   0x4   : > { %s75_s24 = ssub.s32 %s659_s21, %s715_s23  ;;  %s78_s25 = sadd.s32 1, %s655_s20 }
   0x5   : > { %p76_p0 = scmp.eq.s32.totalorder %s75_s24, 0  ;;  %p85_p1 = scmp.ne.s32.totalorder %s655_s20, %s651_s19 }
   0x6   : > { %p86_p2 = scmp.eq.s32.totalorder %s659_s21, 0  ;;  %p91_p3 = scmp.ne.s32.totalorder %s651_s19, %s647_s18 }
   0x7   : > { %s725_s26 = scalar_select %p76_p0, %s655_s20, %s78_s25  }
   0x8   : > { %p87_p4 = por %p86_p2, %p85_p1  ;;  %p92_p5 = scmp.eq.s32.totalorder %s712_s22, 0 }
   0x9   : > { %p547_p6 = scmp.lt.s32.totalorder %s659_s21, 2  ;;  %s207_s28 = sand.u32 1, %s655_s20  }
   0xa   : > { %p729_p7 = por %p92_p5, %p91_p3  ;;  %s530_s29 = sshll.u32 %s207_s28, 3 }
   0xb   : > { %s531_s30 = sshll.u32 %s659_s21, 7  ;;  %s211_s9 = scalar_lea.vmem [#allocation2], %s530_s29 }
   0xc   : > { %s835_s27 = scalar_select %p729_p7, 1, 0 }
   0xd   : > { %s738_s8 = scalar_lea.hbm %s830_s2, %s531_s30  ;;  %s218_s10 = sshll.u32 %s211_s9, 4  ;;  %s740_s10 = int_to_ptr.vmem [resolvable:$true] %s218_s10 }
   0xe   : > { %p742_p8 = pnand %p547_p6, %p87_p4  ;;  %s208_s12 = scalar_lea.sflag [#allocation3], %s207_s28 }
   0xf   : > { %s597_s13 = scalar_lea.hbm %s738_s8, 128  ;;  %s602_s16 = scalar_lea.hbm %s830_s2, 256 }
  0x10   : > { %p598_p11 = scmp.ne.s32.totalorder %s738_s8, %s597_s13  ;;  %p599_p12 = pneg %p742_p8 }
  0x11   : > { %p603_p1 = scmp.lt.s32.totalorder %s738_s8, %s830_s2  ;;  %p604_p2 = scmp.lt.s32.totalorder %s602_s16, %s597_s13 }
  0x12   : > { %p600_p13 = pnand %p599_p12, %p598_p11 }
  0x13   : > { %p605_p3 = por %p604_p2, %p603_p1 }
  0x14   : > { %p601_p0 = pneg %p600_p13 }
  0x16   : > { %p606_p4 = pnand %p605_p3, %p601_p0 }
  0x18   : > { %609 = shalt.err (!%p606_p4)
}
  0x19   : > { %s610_s24 = scalar_lea.vmem %s740_s10, 128  ;;  %s661_s25 = smov [#allocation2]  }
  0x1a   : > { %p611_p5 = scmp.ne.s32.totalorder %s740_s10, %s610_s24  ;;  %s615_s28 = sshll.u32 %s661_s25, 4  ;;  %s616_s28 = int_to_ptr.vmem [resolvable:$false] %s615_s28 }
  0x1b   : > { %s617_s29 = scalar_lea.vmem %s616_s28, 256  ;;  %p618_p13 = scmp.lt.s32.totalorder %s740_s10, %s616_s28 }
  0x1c   : > { %p613_p6 = pnand %p611_p5, %p599_p12  ;;  %p619_p9 = scmp.lt.s32.totalorder %s617_s29, %s610_s24 }
  0x1e   : > { %p614_p11 = pneg %p613_p6  ;;  %p620_p10 = por %p619_p9, %p618_p13 }
  0x20   : > { %p621_p7 = pnand %p620_p10, %p614_p11 }
  0x22   : > { %624 = shalt.err (!%p621_p7)
}
  0x23   : > { %546 = dma.hbm_to_vmem [thread:$0]  (!%p742_p8), %s738_s8, 128, %s740_s10, %s208_s12  }
  0x24   : > { %p837_p0 = scmp.lt.s32.totalorder %s659_s21, 3  ;;  %p838_p1 = scmp.ge.s32.totalorder %s659_s21, 1 }
  0x26   : > { %p224_p12 = pnand %p838_p1, %p837_p0 }
  0x27   : > { %s229_s30 = sand.u32 (!%p224_p12), 1, %s651_s19   ;;  %p839_p9 = scmp.ne.s32.totalorder (!%p224_p12), %s835_s27, 0 }
  0x28   : > { %227 = sbr.rel (%p224_p12) target bundleno = 518 (0x206), region = 32  ;;  %s533_s6 = sshll.u32 (!%p224_p12), %s229_s30, 3 }
  0x29   : > { %s230_s7 = scalar_lea.sflag (!%p224_p12), [#allocation3], %s229_s30  ;;  %s233_s9 = scalar_lea.vmem (!%p224_p12), [#allocation2], %s533_s6 }
  0x2d   : > { %642 = dma.done.wait (%p839_p9), %s230_s7, 128  }
  0x2e   : > { %644 = vsyncadd (%p839_p9), %s230_s7, 4294967168  ;;  %p275_p7 = scmp.lt.s32.totalorder %s712_s22, 1  ;;  %vm300_vm0 = vcmask 261120   ;;  %v296_v1 = vld [vmem:[%s233_s9] sm:$0xff]  ;;  %v662_v4 = vmov 0   ;;  %v298_v5 = vlaneseq  ;;  %vm325_vm4 = vcmask 7168  }
  0x2f   : > { %v304_v3 = vsel %vm300_vm0, %v296_v1, -inf  ;;  %581 = vset.pattern.permute.xlu1 %v662_v4  ;;  %582 = vset.pattern.permute.xlu0 %v662_v4  ;;  %v328_v11 = vmul.f32 0.25, %v296_v1 }
  0x30   : > { %s845_s22 = smov (!%p275_p7, %s712_s22), 1  ;;  %v299_v10 = vand.u32 127, %v298_v5 }
  0x31   : > { %s777_s8 = sshll.u32 %s845_s22, 3 }
  0x32   : > { %s282_s11 = scalar_lea.vmem %s829_s1, %s777_s8  ;;  %s278_s12 = scalar_lea.vmem %s828_s0, %s777_s8 }
  0x33   : > { %v295_v0 = vld [vmem:[%s282_s11] sm:$0xff]  ;;  %s286_s15 = scalar_lea.vmem %s831_s3, %s777_s8  ;;  %s294_s18 = scalar_lea.vmem %s833_s5, %s777_s8 }
  0x34   : > { %v301_v2 = vsel %vm300_vm0, %v295_v0, -inf  ;;  %v327_v6 = vmul.f32 0.25, %v295_v0  ;;  %v297_v29 = vld [vmem:[%s278_s12] sm:$0xff]  ;;  %s290_s28 = scalar_lea.vmem %s832_s4, %s777_s8 }
  0x35   : > { %302 = vmax.xlane.f32.xlu0 %v301_v2 }
  0x39   : > { %305 = vmax.xlane.f32.xlu0 %v304_v3 }
  0xbe   : > { %v785_v7 = vpop.xlane.xlu0 %302 }
  0xbf   : > { %v307_v8 = vsub.f32 %v295_v0, %v785_v7  ;;  %v329_v9 = vmul.f32 0.25, %v785_v7 }
  0xc1   : > { %v308_v12 = vmul.f32 1.442695, %v307_v8  ;;  %v331_v13 = vsub.f32 %v327_v6, %v329_v9 }
  0xc2   : > { %v306_v14 = vpop.xlane.xlu0 %305 }
  0xc3   : > { %583 = vpow2.f32 %v308_v12  ;;  %v332_v15 = vmul.f32 1.442695, %v331_v13  ;;  %v330_v16 = vmul.f32 0.25, %v306_v14  ;;  %vm358_vm1 = vcmp.eq.f32.partialorder %v296_v1, %v306_v14 }
  0xc4   : > { %v359_v17 = vsel %vm358_vm1, %v299_v10, 32 }
  0xc5   : > { %585 = vpow2.f32 %v332_v15  ;;  %v341_v18 = vsub.f32 %v328_v11, %v330_v16  ;;  %v360_v19 = vsel %vm300_vm0, %v359_v17, 2147483647 }
  0xc6   : > { %v362_v20 = vshra.s32 %v360_v19, 16  ;;  %v361_v34 = vand.u32 65535, %v360_v19 }
  0xc7   : > { %v342_v21 = vmul.f32 1.442695, %v341_v18 }
  0xc8   : > { %v364_v22 = vcvt.s32.f32 %v362_v20  ;;  %v363_v37 = vcvt.s32.f32 %v361_v34 }
  0xc9   : > { %587 = vpow2.f32 %v342_v21 }
  0xca   : > { %365 = vmin.xlane.f32.xlu0 %v364_v22 }
  0xd0   : > { %v584_v23 = vpop.eup %583 }
  0xd1   : > { %v310_v24 = vsel %vm300_vm0, %v584_v23, 0.0 }
  0xd2   : > { %v586_v25 = vpop.eup %585  ;;  %311 = vadd.xlane.f32.xlu0 %v310_v24 }
  0xd3   : > { %v334_v26 = vsel %vm300_vm0, %v586_v25, 0.0 }
  0xd4   : > { %335 = vadd.xlane.f32.xlu1 %v334_v26 }
  0xd6   : > { %v588_v27 = vpop.eup %587 }
  0xd7   : > { %v344_v28 = vsel %vm300_vm0, %v588_v27, 0.0 }
  0xd8   : > { %345 = vadd.xlane.f32.xlu1 %v344_v28 }
  0xe9   : > { %317 = vperm.xlu1 %581, %v297_v29  }
 0x153   : > { %v366_v33 = vpop.xlane.xlu0 %365 }
 0x154   : > { %vm367_vm3 = vcmp.eq.f32.partialorder %v364_v22, %v366_v33  ;;  %v372_v54 = vcvt.f32.s32 %v366_v33 }
 0x155   : > { %v368_v40 = vsel %vm367_vm3, %v363_v37, inf }
 0x156   : > { %v373_v57 = vshll.u32 %v372_v54, 16 }
 0x15b   : > { %v312_v49 = vpop.xlane.xlu0 %311 }
 0x15d   : > { %v336_v30 = vpop.xlane.xlu1 %335 }
 0x15e   : > { %589 = vlog2.f32 %v336_v30 }
 0x161   : > { %v346_v31 = vpop.xlane.xlu1 %345 }
 0x162   : > { %591 = vlog2.f32 %v346_v31 }
 0x163   : > { %593 = vlog2.f32 %v312_v49 }
 0x164   : > { %595 = vrcp.f32 %v346_v31 }
 0x165   : > { %v318_v32 = vpop.permute.xlu1 %317 }
 0x166   : > { %vm319_vm2 = vcmp.eq.s32.totalorder %v299_v10, %v318_v32 }
 0x167   : > { %v320_v35 = vsel %vm319_vm2, %v295_v0, 0.0 }
 0x168   : > { %v321_v36 = vsel %vm300_vm0, %v320_v35, 0.0 }
 0x169   : > { %322 = vadd.xlane.f32.xlu0 %v321_v36 }
 0x16b   : > { %v590_v38 = vpop.eup %589 }
 0x16c   : > { %v338_v39 = vmul.f32 0.6931472, %v590_v38 }
 0x16d   : > { %369 = vmin.xlane.f32.xlu0 %v368_v40 }
 0x16e   : > { %v339_v41 = vadd.f32 %v338_v39, %v329_v9 }
 0x16f   : > { %v592_v42 = vpop.eup %591 }
 0x170   : > { %v348_v43 = vmul.f32 0.6931472, %v592_v42  ;;  %v340_v44 = vsub.f32 %v327_v6, %v339_v41  ;;  %v594_v50 = vpop.eup %593 }
 0x171   : > { %v314_v51 = vmul.f32 0.6931472, %v594_v50  ;;  %v596_v60 = vpop.eup %595 }
 0x172   : > { %v349_v45 = vsub.f32 %v341_v18, %v348_v43 }
 0x173   : > { %v315_v52 = vadd.f32 %v314_v51, %v785_v7 }
 0x174   : > { %v350_v46 = vsub.f32 %v349_v45, %v340_v44 }
 0x176   : > { %v351_v47 = vmul.f32 %v588_v27, %v350_v46 }
 0x178   : > { %v352_v48 = vsel %vm300_vm0, %v351_v47, 0.0 }
 0x179   : > { %353 = vadd.xlane.f32.xlu0 %v352_v48 }
 0x1f2   : > { %v323_v53 = vpop.xlane.xlu0 %322 }
 0x1f3   : > { %v324_v55 = vsub.f32 %v315_v52, %v323_v53 }
 0x1f5   : > { %326 = vst.msk [vmem:[%s286_s15] sm:$0xff] %vm325_vm4, %v324_v55 }
 0x1f6   : > { %v370_v56 = vpop.xlane.xlu0 %369 }
 0x1f7   : > { %v371_v58 = vcvt.f32.s32 %v370_v56 }
 0x1f9   : > { %v374_v59 = vadd.s32 %v373_v57, %v371_v58 }
 0x1fb   : > { %375 = vst.msk [vmem:[%s294_s18] sm:$0xff] %vm325_vm4, %v374_v59 }
 0x202   : > { %v354_v61 = vpop.xlane.xlu0 %353 }
 0x203   : > { %v356_v62 = vmul.f32 %v596_v60, %v354_v61 }
 0x205   : > { %357 = vst.msk [vmem:[%s290_s28] sm:$0xff] %vm325_vm4, %v356_v62 }
 0x206 PF: > { %p16_p8 = scmp.ge.s32.totalorder %s715_s23, 4   ;;  %s840_s18 = smov %s651_s19 }
 0x207   : > { %s841_s19 = smov %s655_s20  ;;  %s842_s20 = smov %s725_s26 }
 0x208   : > { %s843_s21 = smov %s715_s23  ;;  %18 = sbr.rel (!%p16_p8) target bundleno = 3 (0x3), region = 102 }
 0x20d   :  { %423 = vsyncpa [#allocation3], 1 }
 0x20e   :  { %425 = vsyncpa [#allocation3 + $0x1], 1 }

</bundles_post_ra>
